<compile_context>
chip_gen: v6e
topology: v6e:2x2x1
jax: 0.10.0
libtpu: 0.0.40
codegen_flags: <defaults>
</compile_context>

<pallas_src>
import functools

import jax
import jax.numpy as jnp
from jax.experimental import pallas as pl
from jax.experimental.pallas import tpu as pltpu


def _copy_kernel(x_ref, o_ref):
    # Identity copy of the current tile (mem-bound; VPU/MXU slots all idle).
    o_ref[...] = x_ref[...]


def _resolve_view_size(numel, size):
    """Resolve a torch-style view size tuple (may contain one -1)."""
    size = tuple(int(s) for s in size)
    if size.count(-1) > 1:
        raise ValueError("only one dimension can be inferred (-1)")
    known = 1
    for s in size:
        if s != -1:
            known *= s
    if -1 in size:
        if known == 0 or numel % known != 0:
            raise ValueError(f"shape {size} is invalid for input of size {numel}")
        size = tuple(numel // known if s == -1 else s for s in size)
    elif known != numel:
        raise ValueError(f"shape {size} is invalid for input of size {numel}")
    return size


def _sublane_multiple(dtype):
    """Native sublane packing for the dtype (8 for 32-bit, 16 bf16, 32 int8)."""
    itemsize = jnp.dtype(dtype).itemsize
    if itemsize >= 4:
        return 8
    if itemsize == 2:
        return 16
    return 32


_LANE_CANDIDATES = (1024, 512, 256, 128)
_MIN_BLOCK_BYTES = 1 << 20
_MAX_BLOCK_BYTES = 8 << 20
_FALLBACK_VMEM_BYTES = 64 << 20  # v7x per-TC physical VMEM (smallest current gen)


@functools.lru_cache(maxsize=None)
def _block_policy():
    """Generation-aware (block_bytes, vmem_limit_bytes)."""
    try:
        info = pltpu.get_tpu_info()
        cap = int(getattr(info, "vmem_capacity_bytes", 0)) or _FALLBACK_VMEM_BYTES
    except Exception:  # pragma: no cover - conservative fallback off-TPU
        cap = _FALLBACK_VMEM_BYTES
    if cap <= 0:
        cap = _FALLBACK_VMEM_BYTES
    # in + out, each double-buffered -> 4 live block buffers; keep them at
    # <= half of physical VMEM so Pallas internal scratch keeps headroom.
    block_bytes = max(_MIN_BLOCK_BYTES, min(_MAX_BLOCK_BYTES, cap // 8))
    vmem_limit = min(cap - (16 << 20), 8 * block_bytes)
    vmem_limit = max(vmem_limit, 4 * block_bytes + (4 << 20))
    return block_bytes, int(vmem_limit)


def _pallas_copy(slab, block_shape, grid, index_map, vmem_limit, bytes_accessed):
    return pl.pallas_call(
        _copy_kernel,
        out_shape=jax.ShapeDtypeStruct(slab.shape, slab.dtype),
        grid=grid,
        in_specs=[pl.BlockSpec(block_shape, index_map)],
        out_specs=pl.BlockSpec(block_shape, index_map),
        compiler_params=pltpu.CompilerParams(
            dimension_semantics=("parallel",),
            vmem_limit_bytes=vmem_limit,
        ),
        cost_estimate=pl.CostEstimate(
            flops=0, transcendentals=0, bytes_accessed=bytes_accessed
        ),
    )(slab)


@functools.partial(jax.jit, static_argnums=(1,))
def _view_impl(x, out_shape):
    numel = x.size
    dtype = x.dtype
    itemsize = jnp.dtype(dtype).itemsize
    subl = _sublane_multiple(dtype)
    block_bytes, vmem_limit = _block_policy()
    bytes_accessed = 2 * numel * itemsize  # one HBM read + one HBM write

    lanes = None
    for cand in _LANE_CANDIDATES:
        if numel % cand == 0:
            lanes = cand
            break

    if lanes is not None:
        # Fast path: lane-dense (rows, lanes) slab (row-major == torch layout).
        rows = numel // lanes
        slab = x.reshape(rows, lanes)
        target_rows = max(subl, (block_bytes // (lanes * itemsize)) // subl * subl)
        if rows > target_rows:
            # Large tensor: big blocks, ragged trailing block masked by Pallas.
            block_rows = target_rows
        elif rows >= 2 * subl:
            # Whole slab would fit a single block: still split into >= 2 grid
            # steps so both v7x TensorCores get their own DMA stream.
            half = -(-rows // 2)
            block_rows = -(-half // subl) * subl
        else:
            block_rows = rows  # tiny slab: single full-extent block (legal)
        grid = (pl.cdiv(rows, block_rows),)
        out2d = _pallas_copy(
            slab, (block_rows, lanes), grid, lambda i: (i, 0),
            vmem_limit, bytes_accessed,
        )
    else:
        # Ragged numel (not a multiple of 128): grid a (1, numel) slab along
        # the lane axis; Pallas masks the trailing partial lane block.  No pad,
        # no slice -> still exactly one HBM read + one HBM write.
        slab = x.reshape(1, numel)
        # A (1, L) VMEM tile is padded to `subl` sublanes, so bound the lane
        # block by block_bytes / (itemsize * subl) to keep VMEM footprint sane.
        lane_block = max(128, (block_bytes // (itemsize * subl)) // 128 * 128)
        if numel <= lane_block:
            if numel >= 256:
                half = -(-numel // 2)
                lane_block = -(-half // 128) * 128  # >= 2 steps for megacore
            else:
                lane_block = numel  # full-extent lane dim (legal)
        grid = (pl.cdiv(numel, lane_block),)
        out2d = _pallas_copy(
            slab, (1, lane_block), grid, lambda i: (0, i),
            vmem_limit, bytes_accessed,
        )

    # Final shape change is metadata inside the same jitted computation.
    return out2d.reshape(out_shape)


def pallas_view(x, size, *, materialize=True):
    """Equivalent of torch.Tensor.view(size) for a contiguous tensor.

    materialize=False returns the pure-metadata reshape (zero bytes moved) —
    the true equivalent of torch.view, recommended for production use.
    materialize=True (default) runs the mandated Pallas single-pass copy.
    """
    out_shape = _resolve_view_size(x.size, size)
    if x.size == 0 or not materialize:
        return jnp.reshape(x, out_shape)
    return _view_impl(x, out_shape)


class ViewPallas:
    """Mirror of the PyTorch `View` module (no parameters)."""

    def __init__(self, size, materialize=True):
        self.size = tuple(size)
        self.materialize = materialize

    def __call__(self, tensor):
        return pallas_view(tensor, self.size, materialize=self.materialize)


if __name__ == "__main__":
    key = jax.random.PRNGKey(0)
    k0, k1, k2 = jax.random.split(key, 3)

    # Common case: NCHW activation flattened per batch (numel % 128 == 0).
    x = jax.random.normal(k0, (2, 4, 16, 16), dtype=jnp.float32)
    ref = x.reshape(2, -1)
    mod = ViewPallas((2, -1))
    y = jax.block_until_ready(mod(x))
    assert y.shape == (2, 4 * 16 * 16), y.shape
    assert y.dtype == x.dtype
    assert bool(jnp.all(y == ref))

    # Mid-size case: exercises the >= 2-grid-step (megacore) split path.
    x2 = jax.random.normal(k1, (4, 8, 32, 32), dtype=jnp.float32)
    y2 = jax.block_until_ready(pallas_view(x2, (4, -1)))
    assert y2.shape == (4, 8 * 32 * 32), y2.shape
    assert bool(jnp.all(y2 == x2.reshape(4, -1)))

    # Ragged case (numel % 128 != 0): single-pass masked lane-grid copy.
    x3 = jax.random.normal(k2, (3, 5, 7), dtype=jnp.float32)
    y3 = jax.block_until_ready(pallas_view(x3, (-1,)))
    assert y3.shape == (105,), y3.shape
    assert bool(jnp.all(y3 == x3.reshape(-1)))

    print("KERNEL_OK")
</pallas_src>

<mosaic_0001>
module attributes {stable_mosaic.version = 11 : i64} {
  func.func @_copy_kernel(%arg0: i32, %arg1: memref<2x1024xf32, #tpu.memory_space<vmem>>, %arg2: memref<2x1024xf32, #tpu.memory_space<vmem>>) attributes {dimension_semantics = [#tpu.dimension_semantics<parallel>], iteration_bounds = array<i64: 1>, scalar_prefetch = 0 : i64, scratch_operands = 0 : i64, tpu.core_type = #tpu.core_type<tc>, window_params = [{transform_indices = @transform_0, window_bounds = array<i64: 2, 1024>}, {transform_indices = @transform_1, window_bounds = array<i64: 2, 1024>}]} {
    %c0 = arith.constant 0 : index
    %c0_0 = arith.constant 0 : index
    %0 = vector.load %arg1[%c0, %c0_0] : memref<2x1024xf32, #tpu.memory_space<vmem>>, vector<2x1024xf32>
    %c0_1 = arith.constant 0 : index
    %c0_2 = arith.constant 0 : index
    %1 = vector.load %arg2[%c0_1, %c0_2] : memref<2x1024xf32, #tpu.memory_space<vmem>>, vector<2x1024xf32>
    tpu.vector_store %arg2[%c0_1, %c0_2], %0 {strides = array<i32>} : memref<2x1024xf32, #tpu.memory_space<vmem>>, vector<2x1024xf32>,
    return
  }
  func.func @transform_0(%arg0: i32) -> (i32, i32) {
    %c0_i32 = arith.constant 0 : i32
    %c0_i32_0 = arith.constant 0 : i32
    return %arg0, %c0_i32 : i32, i32
  }
  func.func @transform_1(%arg0: i32) -> (i32, i32) {
    %c0_i32 = arith.constant 0 : i32
    %c0_i32_0 = arith.constant 0 : i32
    return %arg0, %c0_i32 : i32, i32
  }
}

</mosaic_0001>

<bundles_post_ra>
// kernel: _view_impl.1
= control target key start
LH: loop header
LB: loop body
LE: loop exit
PB: predicated region body
PF: predicated region fallthrough
CT: control target
= control target key end

     0   :  { %s70_s0 = inlined_call_operand.vmem [shape: f32[2,1024], index: 0, kind: input, shape index: {}]   ;;  %s71_s1 = inlined_call_operand.hbm [shape: f32[2,1024], index: 1, kind: output, shape index: {}]  }
   0x1   :  { %v9_v0 = vld [vmem:[%s70_s0] sm:$0xff]  ;;  %v10_v1 = vld [vmem:[%s70_s0 + $0x8] sm:$0xff] }
   0x2   :  { %6 = vsyncpa [#allocation3], 0  ;;  %11 = vst [vmem:[#allocation2] sm:$0xff] %v9_v0  ;;  %s50_s10 = smov [#allocation2]  }
   0x3   :  { %12 = vst [vmem:[#allocation2 + $0x8] sm:$0xff] %v10_v1  ;;  %s19_s11 = sshll.u32 %s50_s10, 4  ;;  %s20_s11 = int_to_ptr.vmem [resolvable:$true] %s19_s11 }
   0x4   :  { %s28_s12 = scalar_lea.vmem %s20_s11, 256  ;;  %p33_p1 = scmp.lt.s32.totalorder %s20_s11, %s20_s11 }
   0x5   :  { %p29_p0 = scmp.ne.s32.totalorder %s20_s11, %s28_s12  ;;  %p34_p2 = scmp.lt.s32.totalorder %s28_s12, %s28_s12 }
   0x7   :  { %p35_p3 = por %p34_p2, %p33_p1 }
   0x9   :  { %p36_p4 = pnand %p35_p3, %p29_p0 }
   0xb   :  { %39 = shalt.err (!%p36_p4)
}
   0xc   :  { %22 = dma.vmem_to_hbm [thread:$0]  %s20_s11, 256, %s71_s1, [#allocation3]  }
   0xd   :  { %48 = dma.done.wait [#allocation3], 256  }
   0xe   :  { %49 = vsyncadd [#allocation3], 4294967040 }
   0xf   :  { %26 = vsyncpa [#allocation3], 1 }

</bundles_post_ra>
